<compile_context>
chip_gen: v7x
topology: tpu7x:2x2x1
jax: 0.10.0
libtpu: 0.0.40
codegen_flags: <defaults>
</compile_context>

<pallas_src>
import functools

import jax
import jax.numpy as jnp
from jax import lax
from jax.experimental import pallas as pl
from jax.experimental.pallas import tpu as pltpu


def _round_up(x, m):
    return ((x + m - 1) // m) * m


_VMEM_BUDGET = 40 * 1024 * 1024      # v7x-safe per-TC budget (64 MiB physical)
_VMEM_LIMIT_CAP = 48 * 1024 * 1024   # never ask Mosaic for more than this


def _footprint_bytes(tn, tm, dp, cbytes):
    tiles = 2 * (tn + tm) * dp * cbytes   # double-buffered matmul tiles
    norms = 2 * (tn + tm) * 4             # double-buffered norm side inputs
    outs = 2 * tn * 4 + tn * 4            # output block + running-min scratch
    inter = tn * tm * 4                   # (tm, tn) f32 cross intermediate
    return tiles + norms + outs + inter


def _choose_tiles(n, m, dp, cbytes, tn_max, tm_max):
    """Pick (tn, tm) honoring the (8,128) layout rules and the VMEM budget."""
    n8 = _round_up(n, 8)
    m8 = _round_up(m, 8)
    if n8 <= 128:
        tn = n8  # single lane-tile; block == full dim, so no 128-divisibility issue
    else:
        n128 = _round_up(n, 128)
        # keep the lane dim a multiple of 128 AND give the parallel grid axis
        # >= 2 programs so both v7x TensorCores get work (no-op on v5e/v6e).
        tn = min(tn_max, max(128, _round_up(n128 // 2, 128)))
    tm = min(tm_max, m8)

    # Generation-aware VMEM cap, encoded in the selection logic (not a comment):
    while _footprint_bytes(tn, tm, dp, cbytes) > _VMEM_BUDGET and (tm > 8 or tn > 128):
        if tm >= tn and tm > 8:
            tm = max(8, _round_up(tm // 2, 8))
        elif tn > 128:
            tn = max(128, _round_up(tn // 2, 128))
        else:
            break
    return tn, tm


def _min_l2_kernel(u_ref, l_ref, u2_ref, l2_ref, o_ref, min_scratch):
    """Grid (N//tn, M//tm); axis 1 (labeled-set tiles) is the reduction axis.

    u_ref : (tn, D)  bf16/f32   2*u tile (rows on sublanes, D on lanes)
    l_ref : (tm, D)  bf16/f32   labeled tile
    u2_ref: (1, tn)  f32        hoisted ||u||^2 (from the UNscaled rows)
    l2_ref: (tm, 1)  f32        hoisted ||l||^2 (padded rows set to 1e30)
    o_ref : (1, tn)  f32        lane-dense output block
    min_scratch: (1, tn) f32    running min_j(||l||^2 - 2 u.l)
    """
    j = pl.program_id(1)

    @pl.when(j == 0)
    def _():
        min_scratch[...] = jnp.full_like(min_scratch, jnp.inf)

    # cross[m, n] = <l_m, 2 u_n>  (the 2x is folded into u in the wrapper).
    # Contract the lane (last) dim of BOTH operands -> MXU-native, no transpose.
    # TODO(synk): confirm via pl.lower_as_mlir that no vxpose/relayout of the L
    # tile appears; if one does, feed L as (D, tm) instead.
    cross = lax.dot_general(
        l_ref[...], u_ref[...],
        dimension_numbers=(((1,), (1,)), ((), ())),
        preferred_element_type=jnp.float32,
    )                                                    # (tm, tn) f32
    partial = l2_ref[...] - cross                        # (tm, 1) broadcast
    blk_min = jnp.min(partial, axis=0, keepdims=True)    # (1, tn)
    min_scratch[...] = jnp.minimum(min_scratch[...], blk_min)

    @pl.when(j == pl.num_programs(1) - 1)
    def _():
        # min_j(u^2 + l^2 - 2c) == u^2 + min_j(l^2 - 2c); clamp fp cancellation.
        sq = jnp.maximum(u2_ref[...] + min_scratch[...], 0.0)
        o_ref[...] = jnp.sqrt(sq)


@functools.partial(jax.jit, static_argnames=("tn_max", "tm_max", "use_bf16"))
def calc_distances(u_z, l_z, *, tn_max=512, tm_max=512, use_bf16=True):
    """For every row u of u_z: min_{l in l_z} ||u - l||_2.  Returns (N,) float32."""
    u_z = jnp.asarray(u_z).reshape(u_z.shape[0], -1).astype(jnp.float32)
    l_z = jnp.asarray(l_z).reshape(l_z.shape[0], -1).astype(jnp.float32)
    n, d = u_z.shape
    m, d_l = l_z.shape
    assert d == d_l, "feature dims must match"
    assert m > 0, "labeled set must be non-empty"
    if n == 0:
        return jnp.zeros((0,), jnp.float32)

    cdtype = jnp.bfloat16 if use_bf16 else jnp.float32
    cbytes = 2 if use_bf16 else 4
    dp = _round_up(d, 128)                 # lane-pad D: zero columns change nothing

    tn, tm = _choose_tiles(n, m, dp, cbytes, tn_max, tm_max)
    n_pad = _round_up(n, tn)
    m_pad = _round_up(m, tm)

    # Hoisted squared norms from the UNpadded, UNscaled f32 rows.  They must stay
    # f32: the 1e30 padded-row sentinel is out of bf16 range.
    u2 = jnp.pad(jnp.sum(u_z * u_z, axis=-1), (0, n_pad - n))[None, :]        # (1, n_pad)
    l2 = jnp.pad(jnp.sum(l_z * l_z, axis=-1), (0, m_pad - m),
                 constant_values=1e30)[:, None]                                # (m_pad, 1)

    # Scale (2x, exact in fp, matmul operand ONLY) -> cast -> pad.  Padding after
    # the cast avoids materializing a padded f32 copy of U/L in HBM.
    u_in = jnp.pad((2.0 * u_z).astype(cdtype), ((0, n_pad - n), (0, dp - d)))
    l_in = jnp.pad(l_z.astype(cdtype), ((0, m_pad - m), (0, dp - d)))

    vmem_limit = int(min(
        _VMEM_LIMIT_CAP,
        max(32 * 1024 * 1024,
            _footprint_bytes(tn, tm, dp, cbytes) * 13 // 10 + (2 << 20)),
    ))

    grid = (n_pad // tn, m_pad // tm)
    out = pl.pallas_call(
        _min_l2_kernel,
        out_shape=jax.ShapeDtypeStruct((1, n_pad), jnp.float32),
        grid=grid,
        in_specs=[
            pl.BlockSpec((tn, dp), lambda i, j: (i, 0)),   # 2*U tile (resident across j)
            pl.BlockSpec((tm, dp), lambda i, j: (j, 0)),   # L tile (resident if M <= tm)
            pl.BlockSpec((1, tn), lambda i, j: (0, i)),    # ||u||^2 (lane-dense)
            pl.BlockSpec((tm, 1), lambda i, j: (j, 0)),    # ||l||^2
        ],
        out_specs=pl.BlockSpec((1, tn), lambda i, j: (0, i)),
        scratch_shapes=[pltpu.VMEM((1, tn), jnp.float32)],
        compiler_params=pltpu.CompilerParams(
            dimension_semantics=("parallel", "arbitrary"),
            vmem_limit_bytes=vmem_limit,
        ),
        # TODO(synk): if profiling at small D shows exposed L-tile DMA, add
        # pipeline_mode=pl.Buffered(3) to the L BlockSpec and budget one extra
        # (tm, dp) buffer in _VMEM_BUDGET.
    )(u_in, l_in, u2, l2)
    return out[0, :n]


class DiversityCachedJax:
    """JAX/Pallas port of DiversityCached (cached active-learning diversity scores)."""

    def __init__(self, U_z, L_z, normalize=False, use_bf16=True):
        self.normalize = normalize
        self.use_bf16 = use_bf16  # set False when near-zero distances must be ranked exactly
        self.U_z = jnp.asarray(U_z).reshape(U_z.shape[0], -1)
        self.dists_cache = None
        if L_z is not None and L_z.shape[0] > 0:
            self.dists_cache = calc_distances(self.U_z, jnp.asarray(L_z),
                                              use_bf16=self.use_bf16)

    def forward(self, *_):
        if self.dists_cache is not None:
            dists = self.dists_cache
            if self.normalize:
                # Matches the PyTorch in-place semantics: shift by min, then
                # divide by the max of the SHIFTED values (i.e. the range).
                dists = dists - jnp.min(dists)
                dists = dists / (jnp.max(dists) + 1e-18)
            return dists
        return jnp.ones((self.U_z.shape[0],), dtype=jnp.float32)

    __call__ = forward

    # TODO(synk): the index bookkeeping (dynamic-size row removal / gather) stays
    # host-side JAX; only the pairwise-distance recompute runs through the kernel.
    def update_cache(self, i):
        if isinstance(i, int):
            i = [i]
        i = list(i)
        new_labeled = self.U_z[jnp.asarray(i)]
        iset = set(i)
        keep = [x for x in range(self.U_z.shape[0]) if x not in iset]
        keep_idx = jnp.asarray(keep, dtype=jnp.int32)
        self.U_z = self.U_z[keep_idx]
        if self.U_z.shape[0] == 0:
            self.dists_cache = jnp.zeros((0,), jnp.float32)
            return
        l2_new = calc_distances(self.U_z, new_labeled, use_bf16=self.use_bf16)
        if self.dists_cache is not None:
            self.dists_cache = jnp.minimum(self.dists_cache[keep_idx], l2_new)
        else:
            self.dists_cache = l2_new


if __name__ == "__main__":
    key = jax.random.PRNGKey(0)
    k_u, k_l = jax.random.split(key)

    # Embeddings (N, C, H, W), flattened to D = 32 inside the module.
    U_z = jax.random.normal(k_u, (16, 2, 4, 4), dtype=jnp.float32)   # N=16
    L_z = jax.random.normal(k_l, (8, 2, 4, 4), dtype=jnp.float32)    # M=8

    u = U_z.reshape(16, -1)
    l = L_z.reshape(8, -1)
    ref = jnp.sqrt(jnp.sum((u[:, None, :] - l[None, :, :]) ** 2, axis=-1)).min(axis=-1)

    model = DiversityCachedJax(U_z, L_z, normalize=False)
    dists = jax.block_until_ready(model.forward())
    assert dists.shape == (16,)
    assert jnp.allclose(dists, ref, rtol=2e-2, atol=2e-2), (dists, ref)

    # Normalize branch (plain-JAX glue on top of the cached kernel output).
    # PyTorch semantics: shift by min, divide by max of the shifted values.
    model_n = DiversityCachedJax(U_z, L_z, normalize=True)
    dn = jax.block_until_ready(model_n.forward())
    ref_shift = ref - ref.min()
    ref_n = ref_shift / (ref_shift.max() + 1e-18)
    assert jnp.allclose(dn, ref_n, rtol=5e-2, atol=5e-2), (dn, ref_n)

    # Non-multiple-of-8 shapes (exercises the wrapper padding) + update_cache bookkeeping.
    k_u2, k_l2 = jax.random.split(k_u)
    U2 = jax.random.normal(k_u2, (13, 2, 4, 4), dtype=jnp.float32)   # N=13
    L2 = jax.random.normal(k_l2, (5, 2, 4, 4), dtype=jnp.float32)    # M=5
    u2f = U2.reshape(13, -1)
    l2f = L2.reshape(5, -1)

    m2 = DiversityCachedJax(U2, L2, normalize=False)
    d2 = jax.block_until_ready(m2.forward())
    ref2 = jnp.sqrt(jnp.sum((u2f[:, None, :] - l2f[None, :, :]) ** 2, axis=-1)).min(axis=-1)
    assert d2.shape == (13,)
    assert jnp.allclose(d2, ref2, rtol=2e-2, atol=2e-2), (d2, ref2)

    # Label some instances (list then int) and verify the cached min is maintained.
    cur = list(range(13))
    removed = []
    for sel in ([0, 3], 2):
        sel_list = [sel] if isinstance(sel, int) else list(sel)
        removed += [cur[s] for s in sel_list]
        cur = [cur[x] for x in range(len(cur)) if x not in set(sel_list)]
        m2.update_cache(sel)
    d3 = jax.block_until_ready(m2.forward())
    labeled_all = jnp.concatenate([l2f, u2f[jnp.asarray(removed)]], axis=0)
    rem = u2f[jnp.asarray(cur)]
    ref3 = jnp.sqrt(jnp.sum((rem[:, None, :] - labeled_all[None, :, :]) ** 2, axis=-1)).min(axis=-1)
    assert d3.shape == (len(cur),)
    assert jnp.allclose(d3, ref3, rtol=2e-2, atol=2e-2), (d3, ref3)

    print("KERNEL_OK")
</pallas_src>

<mosaic_0001>
module attributes {stable_mosaic.version = 11 : i64} {
  func.func @_min_l2_kernel(%arg0: i32, %arg1: i32, %arg2: memref<16x128xbf16, #tpu.memory_space<vmem>>, %arg3: memref<8x128xbf16, #tpu.memory_space<vmem>>, %arg4: memref<1x16xf32, #tpu.memory_space<vmem>>, %arg5: memref<8x1xf32, #tpu.memory_space<vmem>>, %arg6: memref<1x16xf32, #tpu.memory_space<vmem>>, %arg7: memref<1x16xf32, #tpu.memory_space<vmem>>) attributes {dimension_semantics = [#tpu.dimension_semantics<parallel>, #tpu.dimension_semantics<arbitrary>], iteration_bounds = array<i64: 1, 1>, scalar_prefetch = 0 : i64, scratch_operands = 1 : i64, tpu.core_type = #tpu.core_type<tc>, window_params = [{transform_indices = @transform_0, window_bounds = array<i64: 16, 128>}, {transform_indices = @transform_1, window_bounds = array<i64: 8, 128>}, {transform_indices = @transform_2, window_bounds = array<i64: 1, 16>}, {transform_indices = @transform_3, window_bounds = array<i64: 8, 1>}, {transform_indices = @transform_4, window_bounds = array<i64: 1, 16>}]} {
    %c0_i32 = arith.constant 0 : i32
    %0 = arith.cmpi eq, %arg1, %c0_i32 : i32
    %1 = arith.extui %0 : i1 to i32
    %c0_i32_0 = arith.constant 0 : i32
    %2 = arith.cmpi ne, %1, %c0_i32_0 : i32
    scf.if %2 {
      %cst_13 = arith.constant 0x7F800000 : f32
      %17 = vector.broadcast %cst_13 : f32 to vector<1x16xf32>
      %c0_14 = arith.constant 0 : index
      %c0_15 = arith.constant 0 : index
      %18 = vector.load %arg7[%c0_14, %c0_15] : memref<1x16xf32, #tpu.memory_space<vmem>>, vector<1x16xf32>
      tpu.vector_store %arg7[%c0_14, %c0_15], %17 {strides = array<i32>} : memref<1x16xf32, #tpu.memory_space<vmem>>, vector<1x16xf32>,
    } else {
    }
    %c0 = arith.constant 0 : index
    %c0_1 = arith.constant 0 : index
    %3 = vector.load %arg3[%c0, %c0_1] : memref<8x128xbf16, #tpu.memory_space<vmem>>, vector<8x128xbf16>
    %c0_2 = arith.constant 0 : index
    %c0_3 = arith.constant 0 : index
    %4 = vector.load %arg2[%c0_2, %c0_3] : memref<16x128xbf16, #tpu.memory_space<vmem>>, vector<16x128xbf16>
    %cst = arith.constant dense<0.000000e+00> : vector<8x16xf32>
    %5 = tpu.matmul %3, %4, %cst {dimension_numbers = #tpu.dot_dimension_numbers<[1], [1], [0], [0], [0, 0, 1, 0], [], []>} : vector<8x128xbf16>, vector<16x128xbf16>, vector<8x16xf32> -> vector<8x16xf32>
    %c0_4 = arith.constant 0 : index
    %c0_5 = arith.constant 0 : index
    %6 = vector.load %arg5[%c0_4, %c0_5] : memref<8x1xf32, #tpu.memory_space<vmem>>, vector<8x1xf32>
    %7 = vector.broadcast %6 : vector<8x1xf32> to vector<8x16xf32>
    %8 = arith.subf %7, %5 : vector<8x16xf32>
    %cst_6 = arith.constant dense<0x7F800000> : vector<16xf32>
    %9 = vector.multi_reduction <minimumf>, %8, %cst_6 [0] : vector<8x16xf32> to vector<16xf32>
    %10 = vector.shape_cast %9 : vector<16xf32> to vector<1x16xf32>
    %c0_7 = arith.constant 0 : index
    %c0_8 = arith.constant 0 : index
    %11 = vector.load %arg7[%c0_7, %c0_8] : memref<1x16xf32, #tpu.memory_space<vmem>>, vector<1x16xf32>
    %12 = arith.minimumf %11, %10 : vector<1x16xf32>
    %c0_9 = arith.constant 0 : index
    %c0_10 = arith.constant 0 : index
    %13 = vector.load %arg7[%c0_9, %c0_10] : memref<1x16xf32, #tpu.memory_space<vmem>>, vector<1x16xf32>
    tpu.vector_store %arg7[%c0_9, %c0_10], %12 {strides = array<i32>} : memref<1x16xf32, #tpu.memory_space<vmem>>, vector<1x16xf32>,
    %c0_i32_11 = arith.constant 0 : i32
    %14 = arith.cmpi eq, %arg1, %c0_i32_11 : i32
    %15 = arith.extui %14 : i1 to i32
    %c0_i32_12 = arith.constant 0 : i32
    %16 = arith.cmpi ne, %15, %c0_i32_12 : i32
    scf.if %16 {
      %c0_13 = arith.constant 0 : index
      %c0_14 = arith.constant 0 : index
      %17 = vector.load %arg4[%c0_13, %c0_14] : memref<1x16xf32, #tpu.memory_space<vmem>>, vector<1x16xf32>
      %c0_15 = arith.constant 0 : index
      %c0_16 = arith.constant 0 : index
      %18 = vector.load %arg7[%c0_15, %c0_16] : memref<1x16xf32, #tpu.memory_space<vmem>>, vector<1x16xf32>
      %19 = arith.addf %17, %18 : vector<1x16xf32>
      %cst_17 = arith.constant 0.000000e+00 : f32
      %20 = vector.broadcast %cst_17 : f32 to vector<1x16xf32>
      %21 = arith.maximumf %19, %20 : vector<1x16xf32>
      %22 = math.sqrt %21 : vector<1x16xf32>
      %c0_18 = arith.constant 0 : index
      %c0_19 = arith.constant 0 : index
      %23 = vector.load %arg6[%c0_18, %c0_19] : memref<1x16xf32, #tpu.memory_space<vmem>>, vector<1x16xf32>
      tpu.vector_store %arg6[%c0_18, %c0_19], %22 {strides = array<i32>} : memref<1x16xf32, #tpu.memory_space<vmem>>, vector<1x16xf32>,
    } else {
    }
    return
  }
  func.func @transform_0(%arg0: i32, %arg1: i32) -> (i32, i32) {
    %c0_i32 = arith.constant 0 : i32
    %c0_i32_0 = arith.constant 0 : i32
    return %arg0, %c0_i32 : i32, i32
  }
  func.func @transform_1(%arg0: i32, %arg1: i32) -> (i32, i32) {
    %c0_i32 = arith.constant 0 : i32
    %c0_i32_0 = arith.constant 0 : i32
    return %arg1, %c0_i32 : i32, i32
  }
  func.func @transform_2(%arg0: i32, %arg1: i32) -> (i32, i32) {
    %c0_i32 = arith.constant 0 : i32
    %c0_i32_0 = arith.constant 0 : i32
    return %c0_i32, %arg0 : i32, i32
  }
  func.func @transform_3(%arg0: i32, %arg1: i32) -> (i32, i32) {
    %c0_i32 = arith.constant 0 : i32
    %c0_i32_0 = arith.constant 0 : i32
    return %arg1, %c0_i32 : i32, i32
  }
  func.func @transform_4(%arg0: i32, %arg1: i32) -> (i32, i32) {
    %c0_i32 = arith.constant 0 : i32
    %c0_i32_0 = arith.constant 0 : i32
    return %c0_i32, %arg0 : i32, i32
  }
}

</mosaic_0001>

<bundles_post_ra>
// kernel: calc_distances.1
= control target key start
LH: loop header
LB: loop body
LE: loop exit
PB: predicated region body
PF: predicated region fallthrough
CT: control target
= control target key end

     0   :  { %v164_v1 = vmov 0.0   ;;  %vm165_vm0 = vmmov 0   ;;  %s221_s0 = inlined_call_operand.vmem [shape: bf16[16,128], index: 0, kind: input, shape index: {}]   ;;  %s222_s1 = inlined_call_operand.vmem [shape: bf16[8,128], index: 1, kind: input, shape index: {}]   ;;  %s223_s2 = inlined_call_operand.vmem [shape: f32[1,16], index: 2, kind: input, shape index: {}]   ;;  %s224_s3 = inlined_call_operand.vmem [shape: f32[8,1], index: 3, kind: input, shape index: {}]   ;;  %s225_s4 = inlined_call_operand.hbm [shape: f32[1,16], index: 4, kind: output, shape index: {}]  }
   0x1   :  { %v137_v0 = vld [vmem:[%s221_s0] sm:$0xff]   ;;  %125 = vmatprep.subr.bf16.mxu0 %v164_v1  ;;  %127 = vmatprep.mubr.msk.bf16.mxu0 %vm165_vm0, %v164_v1 }
   0x2   :  { %v74_v2 = vld [vmem:[%s224_s3] sm:$0xff]  ;;  %126 = vmatpush3.bf16.xpose.msra.mxu0 %v137_v0 }
   0x3   :  { %9 = vsyncpa [#allocation4], 0  ;;  %v166_v3 = vmov 0   ;;  %v25_v4 = vld [vmem:[%s222_s1] sm:$0xf]  ;;  %vm23_vm1 = vcmask 122880  }
   0x4   :  { %136 = vset.pattern.permute.xlu0 %v166_v3  ;;  %v167_v5 = vmov inf   ;;  %vm81_vm2 = vcmask 130048   ;;  %v96_v21 = vld [vmem:[%s223_s2] sm:$0x1]  ;;  %s168_s3 = smov [#allocation3]  }
   0x5   :  { %77 = vperm.xlu0 %136, %v74_v2   ;;  %24 = vst.msk [vmem:[#allocation2] sm:$0x1] %vm23_vm1, %v167_v5  ;;  %s114_s21 = sshll.u32 %s168_s3, 4  ;;  %s115_s21 = int_to_ptr.vmem [resolvable:$true] %s114_s21 }
   0x6   :  { %s140_s22 = scalar_lea.vmem %s115_s21, 16  ;;  %s144_s23 = scalar_lea.vmem %s115_s21, 32 }
   0x7   :  { %p141_p0 = scmp.ne.s32.totalorder %s115_s21, %s140_s22  ;;  %p145_p1 = scmp.lt.s32.totalorder %s115_s21, %s115_s21 }
   0x8   :  { %p146_p2 = scmp.lt.s32.totalorder %s144_s23, %s140_s22 }
   0x9   :  { %128 = vmatmul.mubr.bf16.vlgmr.msra.gmra.mrb[0].mxu0 %v25_v4 }
   0xa   :  { %p147_p3 = por %p146_p2, %p145_p1 }
   0xc   :  { %v89_v18 = vld [vmem:[#allocation2] sm:$0x1]  ;;  %p148_p4 = pnand %p147_p3, %p141_p0 }
  0x84   :  { %v78_v6 = vpop.permute.xlu0 %77 }
  0xdc   :  { %v68_v7 = vpop.f32.mrb[0].mxu0 }
  0xdd   :  { %v80_v8 = vsub.f32 %v78_v6, %v68_v7  ;;  %v129_v9 = vpop.f32.mrb[1].mxu0 }
  0xde   :  { %v71_v10 = vpop.f32.mrb[2].mxu0 }
  0xdf   :  { %v82_v11 = vsel %vm81_vm2, %v80_v8, inf  ;;  %v130_v12 = vpop.f32.mrb[3].mxu0 }
  0xe0   :  { %v83_v13 = vrot.slane %v82_v11, 4 }
  0xe2   :  { %v84_v14 = vmin.f32 %v82_v11, %v83_v13 }
  0xe4   :  { %v85_v15 = vrot.slane %v84_v14, 2 }
  0xe6   :  { %v86_v16 = vmin.f32 %v84_v14, %v85_v15 }
  0xe8   :  { %v87_v17 = vrot.slane %v86_v16, 1 }
  0xea   :  { %v88_v19 = vmin.f32 %v86_v16, %v87_v17 }
  0xec   :  { %v90_v20 = vmin.f32 %v89_v18, %v88_v19 }
  0xee   :  { %92 = vst.msk [vmem:[#allocation2] sm:$0x1] %vm23_vm1, %v90_v20 }
  0xf5   :  { %v97_v22 = vld [vmem:[#allocation2] sm:$0x1] }
  0xf6   :  { %v98_v23 = vadd.f32 %v97_v22, %v96_v21 }
  0xf8   :  { %v99_v24 = vmax.f32 %v98_v23, 0.0 }
  0xfa   :  { %138 = vrsqrt.f32 %v99_v24  ;;  %vm102_vm3 = vcmp.eq.f32.partialorder %v99_v24, inf  ;;  %v105_v27 = vand.u32 2147483648, %v99_v24  ;;  %vm104_vm4 = vcmp.eq.f32.partialorder %v99_v24, 0.0 }
 0x104   :  { %v139_v25 = vpop.eup %138 }
 0x105   :  { %v101_v26 = vmul.f32 %v139_v25, %v99_v24 }
 0x107   :  { %v103_v28 = vsel %vm102_vm3, %v99_v24, %v101_v26 }
 0x108   :  { %v106_v29 = vsel %vm104_vm4, %v105_v27, %v103_v28 }
 0x109   :  { %107 = vst.msk [vmem:[#allocation3] sm:$0x1] %vm23_vm1, %v106_v29 }
 0x10a   :  { %151 = shalt.err (!%p148_p4)
}
 0x10b   :  { %s152_s25 = scalar_lea.hbm %s225_s4, 16 }
 0x10c   :  { %p153_p5 = scmp.ne.s32.totalorder %s225_s4, %s152_s25  ;;  %p156_p6 = scmp.lt.u32.totalorder %s152_s25, %s225_s4 }
 0x10e   :  { %p158_p7 = pnand %p156_p6, %p153_p5 }
 0x110   :  { %161 = shalt.err (!%p158_p7)
}
 0x111   :  { %117 = dma.vmem_to_hbm [thread:$0]  %s115_s21, 16, %s225_s4, [#allocation4]  }
 0x112   :  { %162 = dma.done.wait [#allocation4], 16  }
 0x113   :  { %163 = vsyncadd [#allocation4], 4294967280 }
 0x114   :  { %121 = vsyncpa [#allocation4], 1 }

</bundles_post_ra>
